<compile_context>
chip_gen: v5e
topology: v5e:2x2
jax: 0.10.0
libtpu: 0.0.40
codegen_flags: <defaults>
</compile_context>

<pallas_src>
import jax
import jax.numpy as jnp
from jax.experimental import pallas as pl
from jax.experimental.pallas import tpu as pltpu


def rnn_forward(x, w_ih, w_hh, b_ih, b_hh, w_fc, b_fc):
    """x: (S, B, I) float32. Returns (S, B, O) float32 = logsoftmax(fc(lstm(x)))."""
    S, B, I = x.shape
    H = w_hh.shape[1]
    O = w_fc.shape[0]
    G4 = 4 * H

    # --- wrapper-side weight prep (done once by XLA, off the kernel) ---------
    # PyTorch gate order along the 4H axis is [i, f, g, o]; reorder to
    # [i, f, o, g] so lanes [0, 3H) take sigmoid and lanes [3H, 4H) take tanh.
    order = (0, 1, 3, 2)
    wih_g = w_ih.reshape(4, H, I)                                   # [i,f,g,o]
    whh_g = w_hh.reshape(4, H, H)
    bsum = (b_ih + b_hh).reshape(4, H)
    wih_all = jnp.concatenate([wih_g[k].T for k in order], axis=1)  # (I, 4H)
    whh_all = jnp.concatenate([whh_g[k].T for k in order], axis=1)  # (H, 4H)
    b_all = jnp.concatenate([bsum[k] for k in order], axis=0).reshape(1, G4)
    wfc_t = jnp.transpose(w_fc)                                     # (H, O)
    bfc = b_fc.reshape(1, O)                                        # (1, O)
    x2d = x.reshape(S * B, I)                                       # (S*B, I)

    def kernel(x_ref, wih_ref, whh_ref, b_ref, wfc_ref, bfc_ref, o_ref, hs_ref):
        # Phase 1 (off the recurrence): fused input projection for all time
        # steps, one lane-aligned (S*B, I) @ (I, 4H) matmul, bias folded in.
        xg = (jnp.dot(x_ref[...], wih_ref[...],
                      preferred_element_type=jnp.float32)
              + b_ref[...])                                         # (S*B, 4H)

        whh = whh_ref[...]                                          # (H, 4H)

        # Lane mask (hoisted out of the loop): sigmoid lanes [0, 3H),
        # tanh lanes [3H, 4H).
        sig_lanes = jax.lax.broadcasted_iota(jnp.int32, (B, G4), 1) < 3 * H

        h = jnp.zeros((B, H), jnp.float32)
        c = jnp.zeros((B, H), jnp.float32)

        # Phase 2: serial recurrence, fully unrolled at trace time.  Per step
        # the critical path is ONE (B, H) @ (H, 4H) MXU dot + 3 EUP calls.
        for t in range(S):
            lo = t * B
            pre = xg[lo:lo + B, :] + jnp.dot(
                h, whh, preferred_element_type=jnp.float32)          # (B, 4H)
            act = jnp.where(sig_lanes, jax.nn.sigmoid(pre), jnp.tanh(pre))
            i_g = act[:, 0:H]
            f_g = act[:, H:2 * H]
            o_g = act[:, 2 * H:3 * H]
            g_g = act[:, 3 * H:4 * H]
            c = f_g * c + i_g * g_g
            h = o_g * jnp.tanh(c)
            # No dependency into step t+1 -> hidden under the next h @ W_hh.
            hs_ref[lo:lo + B, :] = h

        # Phase 3 (off the recurrence): batched FC + log-softmax, one bulk
        # (S*B, O) store.
        hflat = hs_ref[...]                                          # (S*B, H)
        logits = (jnp.dot(hflat, wfc_ref[...],
                          preferred_element_type=jnp.float32)
                  + bfc_ref[...])                                    # (S*B, O)
        m = jnp.max(logits, axis=-1, keepdims=True)
        lse = jnp.log(jnp.sum(jnp.exp(logits - m), axis=-1, keepdims=True)) + m
        o_ref[...] = (logits - lse).astype(o_ref.dtype)

    out2d = pl.pallas_call(
        kernel,
        out_shape=jax.ShapeDtypeStruct((S * B, O), jnp.float32),
        grid=(1,),
        in_specs=[
            pl.BlockSpec((S * B, I), lambda i: (0, 0)),
            pl.BlockSpec((I, G4), lambda i: (0, 0)),
            pl.BlockSpec((H, G4), lambda i: (0, 0)),
            pl.BlockSpec((1, G4), lambda i: (0, 0)),
            pl.BlockSpec((H, O), lambda i: (0, 0)),
            pl.BlockSpec((1, O), lambda i: (0, 0)),
        ],
        out_specs=pl.BlockSpec((S * B, O), lambda i: (0, 0)),
        scratch_shapes=[pltpu.VMEM((S * B, H), jnp.float32)],
        compiler_params=pltpu.CompilerParams(
            dimension_semantics=("arbitrary",),
        ),
    )(x2d, wih_all, whh_all, b_all, wfc_t, bfc)

    return out2d.reshape(S, B, O)


def rnn_reference(x, w_ih, w_hh, b_ih, b_hh, w_fc, b_fc):
    """Pure-JAX reference with PyTorch gate order [i, f, g, o]."""
    S, B, I = x.shape
    H = w_hh.shape[1]
    h = jnp.zeros((B, H), jnp.float32)
    c = jnp.zeros((B, H), jnp.float32)
    outs = []
    for t in range(S):
        gates = x[t] @ w_ih.T + b_ih + h @ w_hh.T + b_hh           # (B, 4H)
        i = jax.nn.sigmoid(gates[:, 0:H])
        f = jax.nn.sigmoid(gates[:, H:2 * H])
        g = jnp.tanh(gates[:, 2 * H:3 * H])
        o = jax.nn.sigmoid(gates[:, 3 * H:4 * H])
        c = f * c + i * g
        h = o * jnp.tanh(c)
        outs.append(h)
    hseq = jnp.stack(outs)                                          # (S, B, H)
    logits = hseq @ w_fc.T + b_fc
    return jax.nn.log_softmax(logits, axis=2)


if __name__ == "__main__":
    # Small shapes consistent with the module's forward:
    # input (seq=8, batch=2, input_size=16); hidden_size=32; output_size=8
    S, B, I, H, O = 8, 2, 16, 32, 8

    key = jax.random.PRNGKey(0)
    k = jax.random.split(key, 8)
    bound = 1.0 / jnp.sqrt(jnp.float32(H))   # PyTorch-style uniform init range

    x = jax.random.normal(k[0], (S, B, I), dtype=jnp.float32)
    w_ih = jax.random.uniform(k[1], (4 * H, I), jnp.float32, -bound, bound)
    w_hh = jax.random.uniform(k[2], (4 * H, H), jnp.float32, -bound, bound)
    b_ih = jax.random.uniform(k[3], (4 * H,), jnp.float32, -bound, bound)
    b_hh = jax.random.uniform(k[4], (4 * H,), jnp.float32, -bound, bound)
    w_fc = jax.random.uniform(k[5], (O, H), jnp.float32, -bound, bound)
    b_fc = jax.random.uniform(k[6], (O,), jnp.float32, -bound, bound)

    out = rnn_forward(x, w_ih, w_hh, b_ih, b_hh, w_fc, b_fc)
    jax.block_until_ready(out)

    # Sanity 1: log-softmax rows must sum to ~1 in prob space.
    probs_sum = jnp.sum(jnp.exp(out), axis=-1)
    assert out.shape == (S, B, O)
    assert bool(jnp.allclose(probs_sum, 1.0, atol=1e-5))

    # Sanity 2: matches the pure-JAX LSTM reference (guards the gate reorder).
    ref = rnn_reference(x, w_ih, w_hh, b_ih, b_hh, w_fc, b_fc)
    assert bool(jnp.allclose(out, ref, atol=1e-5, rtol=1e-5))

    print("KERNEL_OK")
</pallas_src>

<mosaic_0001>
module attributes {stable_mosaic.version = 11 : i64} {
  func.func @kernel(%arg0: i32, %arg1: memref<16x16xf32, #tpu.memory_space<vmem>>, %arg2: memref<16x128xf32, #tpu.memory_space<vmem>>, %arg3: memref<32x128xf32, #tpu.memory_space<vmem>>, %arg4: memref<1x128xf32, #tpu.memory_space<vmem>>, %arg5: memref<32x8xf32, #tpu.memory_space<vmem>>, %arg6: memref<1x8xf32, #tpu.memory_space<vmem>>, %arg7: memref<16x8xf32, #tpu.memory_space<vmem>>, %arg8: memref<16x32xf32, #tpu.memory_space<vmem>>) attributes {dimension_semantics = [#tpu.dimension_semantics<arbitrary>], iteration_bounds = array<i64: 1>, scalar_prefetch = 0 : i64, scratch_operands = 1 : i64, tpu.core_type = #tpu.core_type<tc>, window_params = [{pipeline_mode = #tpu.pipeline_mode<synchronous>, transform_indices = @transform_0, window_bounds = array<i64: 16, 16>}, {pipeline_mode = #tpu.pipeline_mode<synchronous>, transform_indices = @transform_1, window_bounds = array<i64: 16, 128>}, {pipeline_mode = #tpu.pipeline_mode<synchronous>, transform_indices = @transform_2, window_bounds = array<i64: 32, 128>}, {pipeline_mode = #tpu.pipeline_mode<synchronous>, transform_indices = @transform_3, window_bounds = array<i64: 1, 128>}, {pipeline_mode = #tpu.pipeline_mode<synchronous>, transform_indices = @transform_4, window_bounds = array<i64: 32, 8>}, {pipeline_mode = #tpu.pipeline_mode<synchronous>, transform_indices = @transform_5, window_bounds = array<i64: 1, 8>}, {pipeline_mode = #tpu.pipeline_mode<synchronous>, transform_indices = @transform_6, window_bounds = array<i64: 16, 8>}]} {
    %c0 = arith.constant 0 : index
    %c0_0 = arith.constant 0 : index
    %0 = vector.load %arg1[%c0, %c0_0] : memref<16x16xf32, #tpu.memory_space<vmem>>, vector<16x16xf32>
    %c0_1 = arith.constant 0 : index
    %c0_2 = arith.constant 0 : index
    %1 = vector.load %arg2[%c0_1, %c0_2] : memref<16x128xf32, #tpu.memory_space<vmem>>, vector<16x128xf32>
    %cst = arith.constant dense<0.000000e+00> : vector<16x128xf32>
    %2 = tpu.matmul %0, %1, %cst {dimension_numbers = #tpu.dot_dimension_numbers<[1], [0], [0], [1], [0, 0, 1, 1], [], []>} : vector<16x16xf32>, vector<16x128xf32>, vector<16x128xf32> -> vector<16x128xf32>
    %c0_3 = arith.constant 0 : index
    %c0_4 = arith.constant 0 : index
    %3 = vector.load %arg4[%c0_3, %c0_4] : memref<1x128xf32, #tpu.memory_space<vmem>>, vector<1x128xf32>
    %4 = vector.broadcast %3 : vector<1x128xf32> to vector<16x128xf32>
    %5 = arith.addf %2, %4 : vector<16x128xf32>
    %c0_5 = arith.constant 0 : index
    %c0_6 = arith.constant 0 : index
    %6 = vector.load %arg3[%c0_5, %c0_6] : memref<32x128xf32, #tpu.memory_space<vmem>>, vector<32x128xf32>
    %7 = tpu.iota {dimensions = array<i32: 1>} : vector<2x128xi32>
    %c96_i32 = arith.constant 96 : i32
    %8 = vector.broadcast %c96_i32 : i32 to vector<2x128xi32>
    %9 = arith.cmpi slt, %7, %8 : vector<2x128xi32>
    %cst_7 = arith.constant 0.000000e+00 : f32
    %10 = vector.broadcast %cst_7 : f32 to vector<2x32xf32>
    %cst_8 = arith.constant 0.000000e+00 : f32
    %11 = vector.broadcast %cst_8 : f32 to vector<2x32xf32>
    %12 = vector.extract_strided_slice %5 {offsets = [0, 0], sizes = [2, 128], strides = [1, 1]} : vector<16x128xf32> to vector<2x128xf32>
    %cst_9 = arith.constant dense<0.000000e+00> : vector<2x128xf32>
    %13 = tpu.matmul %10, %6, %cst_9 {dimension_numbers = #tpu.dot_dimension_numbers<[1], [0], [0], [1], [0, 0, 1, 1], [], []>} : vector<2x32xf32>, vector<32x128xf32>, vector<2x128xf32> -> vector<2x128xf32>
    %14 = arith.addf %12, %13 : vector<2x128xf32>
    %15 = arith.negf %14 : vector<2x128xf32>
    %16 = math.exp %15 : vector<2x128xf32>
    %cst_10 = arith.constant 1.000000e+00 : f32
    %17 = vector.broadcast %cst_10 : f32 to vector<2x128xf32>
    %18 = arith.addf %17, %16 : vector<2x128xf32>
    %19 = arith.divf %17, %18 : vector<2x128xf32>
    %20 = math.tanh %14 : vector<2x128xf32>
    %21 = arith.select %9, %19, %20 : vector<2x128xi1>, vector<2x128xf32>
    %22 = vector.extract_strided_slice %21 {offsets = [0, 0], sizes = [2, 32], strides = [1, 1]} : vector<2x128xf32> to vector<2x32xf32>
    %23 = vector.extract_strided_slice %21 {offsets = [0, 32], sizes = [2, 32], strides = [1, 1]} : vector<2x128xf32> to vector<2x32xf32>
    %24 = vector.extract_strided_slice %21 {offsets = [0, 64], sizes = [2, 32], strides = [1, 1]} : vector<2x128xf32> to vector<2x32xf32>
    %25 = vector.extract_strided_slice %21 {offsets = [0, 96], sizes = [2, 32], strides = [1, 1]} : vector<2x128xf32> to vector<2x32xf32>
    %26 = arith.mulf %23, %11 : vector<2x32xf32>
    %27 = arith.mulf %22, %25 : vector<2x32xf32>
    %28 = arith.addf %26, %27 : vector<2x32xf32>
    %29 = math.tanh %28 : vector<2x32xf32>
    %30 = arith.mulf %24, %29 : vector<2x32xf32>
    %c0_11 = arith.constant 0 : index
    %c0_12 = arith.constant 0 : index
    %31 = vector.load %arg8[%c0_11, %c0_12] : memref<16x32xf32, #tpu.memory_space<vmem>>, vector<2x32xf32>
    tpu.vector_store %arg8[%c0_11, %c0_12], %30 {strides = array<i32>} : memref<16x32xf32, #tpu.memory_space<vmem>>, vector<2x32xf32>,
    %32 = vector.extract_strided_slice %5 {offsets = [2, 0], sizes = [2, 128], strides = [1, 1]} : vector<16x128xf32> to vector<2x128xf32>
    %cst_13 = arith.constant dense<0.000000e+00> : vector<2x128xf32>
    %33 = tpu.matmul %30, %6, %cst_13 {dimension_numbers = #tpu.dot_dimension_numbers<[1], [0], [0], [1], [0, 0, 1, 1], [], []>} : vector<2x32xf32>, vector<32x128xf32>, vector<2x128xf32> -> vector<2x128xf32>
    %34 = arith.addf %32, %33 : vector<2x128xf32>
    %35 = arith.negf %34 : vector<2x128xf32>
    %36 = math.exp %35 : vector<2x128xf32>
    %cst_14 = arith.constant 1.000000e+00 : f32
    %37 = vector.broadcast %cst_14 : f32 to vector<2x128xf32>
    %38 = arith.addf %37, %36 : vector<2x128xf32>
    %39 = arith.divf %37, %38 : vector<2x128xf32>
    %40 = math.tanh %34 : vector<2x128xf32>
    %41 = arith.select %9, %39, %40 : vector<2x128xi1>, vector<2x128xf32>
    %42 = vector.extract_strided_slice %41 {offsets = [0, 0], sizes = [2, 32], strides = [1, 1]} : vector<2x128xf32> to vector<2x32xf32>
    %43 = vector.extract_strided_slice %41 {offsets = [0, 32], sizes = [2, 32], strides = [1, 1]} : vector<2x128xf32> to vector<2x32xf32>
    %44 = vector.extract_strided_slice %41 {offsets = [0, 64], sizes = [2, 32], strides = [1, 1]} : vector<2x128xf32> to vector<2x32xf32>
    %45 = vector.extract_strided_slice %41 {offsets = [0, 96], sizes = [2, 32], strides = [1, 1]} : vector<2x128xf32> to vector<2x32xf32>
    %46 = arith.mulf %43, %28 : vector<2x32xf32>
    %47 = arith.mulf %42, %45 : vector<2x32xf32>
    %48 = arith.addf %46, %47 : vector<2x32xf32>
    %49 = math.tanh %48 : vector<2x32xf32>
    %50 = arith.mulf %44, %49 : vector<2x32xf32>
    %c2 = arith.constant 2 : index
    %c0_15 = arith.constant 0 : index
    %51 = vector.load %arg8[%c2, %c0_15] : memref<16x32xf32, #tpu.memory_space<vmem>>, vector<2x32xf32>
    tpu.vector_store %arg8[%c2, %c0_15], %50 {strides = array<i32>} : memref<16x32xf32, #tpu.memory_space<vmem>>, vector<2x32xf32>,
    %52 = vector.extract_strided_slice %5 {offsets = [4, 0], sizes = [2, 128], strides = [1, 1]} : vector<16x128xf32> to vector<2x128xf32>
    %cst_16 = arith.constant dense<0.000000e+00> : vector<2x128xf32>
    %53 = tpu.matmul %50, %6, %cst_16 {dimension_numbers = #tpu.dot_dimension_numbers<[1], [0], [0], [1], [0, 0, 1, 1], [], []>} : vector<2x32xf32>, vector<32x128xf32>, vector<2x128xf32> -> vector<2x128xf32>
    %54 = arith.addf %52, %53 : vector<2x128xf32>
    %55 = arith.negf %54 : vector<2x128xf32>
    %56 = math.exp %55 : vector<2x128xf32>
    %cst_17 = arith.constant 1.000000e+00 : f32
    %57 = vector.broadcast %cst_17 : f32 to vector<2x128xf32>
    %58 = arith.addf %57, %56 : vector<2x128xf32>
    %59 = arith.divf %57, %58 : vector<2x128xf32>
    %60 = math.tanh %54 : vector<2x128xf32>
    %61 = arith.select %9, %59, %60 : vector<2x128xi1>, vector<2x128xf32>
    %62 = vector.extract_strided_slice %61 {offsets = [0, 0], sizes = [2, 32], strides = [1, 1]} : vector<2x128xf32> to vector<2x32xf32>
    %63 = vector.extract_strided_slice %61 {offsets = [0, 32], sizes = [2, 32], strides = [1, 1]} : vector<2x128xf32> to vector<2x32xf32>
    %64 = vector.extract_strided_slice %61 {offsets = [0, 64], sizes = [2, 32], strides = [1, 1]} : vector<2x128xf32> to vector<2x32xf32>
    %65 = vector.extract_strided_slice %61 {offsets = [0, 96], sizes = [2, 32], strides = [1, 1]} : vector<2x128xf32> to vector<2x32xf32>
    %66 = arith.mulf %63, %48 : vector<2x32xf32>
    %67 = arith.mulf %62, %65 : vector<2x32xf32>
    %68 = arith.addf %66, %67 : vector<2x32xf32>
    %69 = math.tanh %68 : vector<2x32xf32>
    %70 = arith.mulf %64, %69 : vector<2x32xf32>
    %c4 = arith.constant 4 : index
    %c0_18 = arith.constant 0 : index
    %71 = vector.load %arg8[%c4, %c0_18] : memref<16x32xf32, #tpu.memory_space<vmem>>, vector<2x32xf32>
    tpu.vector_store %arg8[%c4, %c0_18], %70 {strides = array<i32>} : memref<16x32xf32, #tpu.memory_space<vmem>>, vector<2x32xf32>,
    %72 = vector.extract_strided_slice %5 {offsets = [6, 0], sizes = [2, 128], strides = [1, 1]} : vector<16x128xf32> to vector<2x128xf32>
    %cst_19 = arith.constant dense<0.000000e+00> : vector<2x128xf32>
    %73 = tpu.matmul %70, %6, %cst_19 {dimension_numbers = #tpu.dot_dimension_numbers<[1], [0], [0], [1], [0, 0, 1, 1], [], []>} : vector<2x32xf32>, vector<32x128xf32>, vector<2x128xf32> -> vector<2x128xf32>
    %74 = arith.addf %72, %73 : vector<2x128xf32>
    %75 = arith.negf %74 : vector<2x128xf32>
    %76 = math.exp %75 : vector<2x128xf32>
    %cst_20 = arith.constant 1.000000e+00 : f32
    %77 = vector.broadcast %cst_20 : f32 to vector<2x128xf32>
    %78 = arith.addf %77, %76 : vector<2x128xf32>
    %79 = arith.divf %77, %78 : vector<2x128xf32>
    %80 = math.tanh %74 : vector<2x128xf32>
    %81 = arith.select %9, %79, %80 : vector<2x128xi1>, vector<2x128xf32>
    %82 = vector.extract_strided_slice %81 {offsets = [0, 0], sizes = [2, 32], strides = [1, 1]} : vector<2x128xf32> to vector<2x32xf32>
    %83 = vector.extract_strided_slice %81 {offsets = [0, 32], sizes = [2, 32], strides = [1, 1]} : vector<2x128xf32> to vector<2x32xf32>
    %84 = vector.extract_strided_slice %81 {offsets = [0, 64], sizes = [2, 32], strides = [1, 1]} : vector<2x128xf32> to vector<2x32xf32>
    %85 = vector.extract_strided_slice %81 {offsets = [0, 96], sizes = [2, 32], strides = [1, 1]} : vector<2x128xf32> to vector<2x32xf32>
    %86 = arith.mulf %83, %68 : vector<2x32xf32>
    %87 = arith.mulf %82, %85 : vector<2x32xf32>
    %88 = arith.addf %86, %87 : vector<2x32xf32>
    %89 = math.tanh %88 : vector<2x32xf32>
    %90 = arith.mulf %84, %89 : vector<2x32xf32>
    %c6 = arith.constant 6 : index
    %c0_21 = arith.constant 0 : index
    %91 = vector.load %arg8[%c6, %c0_21] : memref<16x32xf32, #tpu.memory_space<vmem>>, vector<2x32xf32>
    tpu.vector_store %arg8[%c6, %c0_21], %90 {strides = array<i32>} : memref<16x32xf32, #tpu.memory_space<vmem>>, vector<2x32xf32>,
    %92 = vector.extract_strided_slice %5 {offsets = [8, 0], sizes = [2, 128], strides = [1, 1]} : vector<16x128xf32> to vector<2x128xf32>
    %cst_22 = arith.constant dense<0.000000e+00> : vector<2x128xf32>
    %93 = tpu.matmul %90, %6, %cst_22 {dimension_numbers = #tpu.dot_dimension_numbers<[1], [0], [0], [1], [0, 0, 1, 1], [], []>} : vector<2x32xf32>, vector<32x128xf32>, vector<2x128xf32> -> vector<2x128xf32>
    %94 = arith.addf %92, %93 : vector<2x128xf32>
    %95 = arith.negf %94 : vector<2x128xf32>
    %96 = math.exp %95 : vector<2x128xf32>
    %cst_23 = arith.constant 1.000000e+00 : f32
    %97 = vector.broadcast %cst_23 : f32 to vector<2x128xf32>
    %98 = arith.addf %97, %96 : vector<2x128xf32>
    %99 = arith.divf %97, %98 : vector<2x128xf32>
    %100 = math.tanh %94 : vector<2x128xf32>
    %101 = arith.select %9, %99, %100 : vector<2x128xi1>, vector<2x128xf32>
    %102 = vector.extract_strided_slice %101 {offsets = [0, 0], sizes = [2, 32], strides = [1, 1]} : vector<2x128xf32> to vector<2x32xf32>
    %103 = vector.extract_strided_slice %101 {offsets = [0, 32], sizes = [2, 32], strides = [1, 1]} : vector<2x128xf32> to vector<2x32xf32>
    %104 = vector.extract_strided_slice %101 {offsets = [0, 64], sizes = [2, 32], strides = [1, 1]} : vector<2x128xf32> to vector<2x32xf32>
    %105 = vector.extract_strided_slice %101 {offsets = [0, 96], sizes = [2, 32], strides = [1, 1]} : vector<2x128xf32> to vector<2x32xf32>
    %106 = arith.mulf %103, %88 : vector<2x32xf32>
    %107 = arith.mulf %102, %105 : vector<2x32xf32>
    %108 = arith.addf %106, %107 : vector<2x32xf32>
    %109 = math.tanh %108 : vector<2x32xf32>
    %110 = arith.mulf %104, %109 : vector<2x32xf32>
    %c8 = arith.constant 8 : index
    %c0_24 = arith.constant 0 : index
    %111 = vector.load %arg8[%c8, %c0_24] : memref<16x32xf32, #tpu.memory_space<vmem>>, vector<2x32xf32>
    tpu.vector_store %arg8[%c8, %c0_24], %110 {strides = array<i32>} : memref<16x32xf32, #tpu.memory_space<vmem>>, vector<2x32xf32>,
    %112 = vector.extract_strided_slice %5 {offsets = [10, 0], sizes = [2, 128], strides = [1, 1]} : vector<16x128xf32> to vector<2x128xf32>
    %cst_25 = arith.constant dense<0.000000e+00> : vector<2x128xf32>
    %113 = tpu.matmul %110, %6, %cst_25 {dimension_numbers = #tpu.dot_dimension_numbers<[1], [0], [0], [1], [0, 0, 1, 1], [], []>} : vector<2x32xf32>, vector<32x128xf32>, vector<2x128xf32> -> vector<2x128xf32>
    %114 = arith.addf %112, %113 : vector<2x128xf32>
    %115 = arith.negf %114 : vector<2x128xf32>
    %116 = math.exp %115 : vector<2x128xf32>
    %cst_26 = arith.constant 1.000000e+00 : f32
    %117 = vector.broadcast %cst_26 : f32 to vector<2x128xf32>
    %118 = arith.addf %117, %116 : vector<2x128xf32>
    %119 = arith.divf %117, %118 : vector<2x128xf32>
    %120 = math.tanh %114 : vector<2x128xf32>
    %121 = arith.select %9, %119, %120 : vector<2x128xi1>, vector<2x128xf32>
    %122 = vector.extract_strided_slice %121 {offsets = [0, 0], sizes = [2, 32], strides = [1, 1]} : vector<2x128xf32> to vector<2x32xf32>
    %123 = vector.extract_strided_slice %121 {offsets = [0, 32], sizes = [2, 32], strides = [1, 1]} : vector<2x128xf32> to vector<2x32xf32>
    %124 = vector.extract_strided_slice %121 {offsets = [0, 64], sizes = [2, 32], strides = [1, 1]} : vector<2x128xf32> to vector<2x32xf32>
    %125 = vector.extract_strided_slice %121 {offsets = [0, 96], sizes = [2, 32], strides = [1, 1]} : vector<2x128xf32> to vector<2x32xf32>
    %126 = arith.mulf %123, %108 : vector<2x32xf32>
    %127 = arith.mulf %122, %125 : vector<2x32xf32>
    %128 = arith.addf %126, %127 : vector<2x32xf32>
    %129 = math.tanh %128 : vector<2x32xf32>
    %130 = arith.mulf %124, %129 : vector<2x32xf32>
    %c10 = arith.constant 10 : index
    %c0_27 = arith.constant 0 : index
    %131 = vector.load %arg8[%c10, %c0_27] : memref<16x32xf32, #tpu.memory_space<vmem>>, vector<2x32xf32>
    tpu.vector_store %arg8[%c10, %c0_27], %130 {strides = array<i32>} : memref<16x32xf32, #tpu.memory_space<vmem>>, vector<2x32xf32>,
    %132 = vector.extract_strided_slice %5 {offsets = [12, 0], sizes = [2, 128], strides = [1, 1]} : vector<16x128xf32> to vector<2x128xf32>
    %cst_28 = arith.constant dense<0.000000e+00> : vector<2x128xf32>
    %133 = tpu.matmul %130, %6, %cst_28 {dimension_numbers = #tpu.dot_dimension_numbers<[1], [0], [0], [1], [0, 0, 1, 1], [], []>} : vector<2x32xf32>, vector<32x128xf32>, vector<2x128xf32> -> vector<2x128xf32>
    %134 = arith.addf %132, %133 : vector<2x128xf32>
    %135 = arith.negf %134 : vector<2x128xf32>
    %136 = math.exp %135 : vector<2x128xf32>
    %cst_29 = arith.constant 1.000000e+00 : f32
    %137 = vector.broadcast %cst_29 : f32 to vector<2x128xf32>
    %138 = arith.addf %137, %136 : vector<2x128xf32>
    %139 = arith.divf %137, %138 : vector<2x128xf32>
    %140 = math.tanh %134 : vector<2x128xf32>
    %141 = arith.select %9, %139, %140 : vector<2x128xi1>, vector<2x128xf32>
    %142 = vector.extract_strided_slice %141 {offsets = [0, 0], sizes = [2, 32], strides = [1, 1]} : vector<2x128xf32> to vector<2x32xf32>
    %143 = vector.extract_strided_slice %141 {offsets = [0, 32], sizes = [2, 32], strides = [1, 1]} : vector<2x128xf32> to vector<2x32xf32>
    %144 = vector.extract_strided_slice %141 {offsets = [0, 64], sizes = [2, 32], strides = [1, 1]} : vector<2x128xf32> to vector<2x32xf32>
    %145 = vector.extract_strided_slice %141 {offsets = [0, 96], sizes = [2, 32], strides = [1, 1]} : vector<2x128xf32> to vector<2x32xf32>
    %146 = arith.mulf %143, %128 : vector<2x32xf32>
    %147 = arith.mulf %142, %145 : vector<2x32xf32>
    %148 = arith.addf %146, %147 : vector<2x32xf32>
    %149 = math.tanh %148 : vector<2x32xf32>
    %150 = arith.mulf %144, %149 : vector<2x32xf32>
    %c12 = arith.constant 12 : index
    %c0_30 = arith.constant 0 : index
    %151 = vector.load %arg8[%c12, %c0_30] : memref<16x32xf32, #tpu.memory_space<vmem>>, vector<2x32xf32>
    tpu.vector_store %arg8[%c12, %c0_30], %150 {strides = array<i32>} : memref<16x32xf32, #tpu.memory_space<vmem>>, vector<2x32xf32>,
    %152 = vector.extract_strided_slice %5 {offsets = [14, 0], sizes = [2, 128], strides = [1, 1]} : vector<16x128xf32> to vector<2x128xf32>
    %cst_31 = arith.constant dense<0.000000e+00> : vector<2x128xf32>
    %153 = tpu.matmul %150, %6, %cst_31 {dimension_numbers = #tpu.dot_dimension_numbers<[1], [0], [0], [1], [0, 0, 1, 1], [], []>} : vector<2x32xf32>, vector<32x128xf32>, vector<2x128xf32> -> vector<2x128xf32>
    %154 = arith.addf %152, %153 : vector<2x128xf32>
    %155 = arith.negf %154 : vector<2x128xf32>
    %156 = math.exp %155 : vector<2x128xf32>
    %cst_32 = arith.constant 1.000000e+00 : f32
    %157 = vector.broadcast %cst_32 : f32 to vector<2x128xf32>
    %158 = arith.addf %157, %156 : vector<2x128xf32>
    %159 = arith.divf %157, %158 : vector<2x128xf32>
    %160 = math.tanh %154 : vector<2x128xf32>
    %161 = arith.select %9, %159, %160 : vector<2x128xi1>, vector<2x128xf32>
    %162 = vector.extract_strided_slice %161 {offsets = [0, 0], sizes = [2, 32], strides = [1, 1]} : vector<2x128xf32> to vector<2x32xf32>
    %163 = vector.extract_strided_slice %161 {offsets = [0, 32], sizes = [2, 32], strides = [1, 1]} : vector<2x128xf32> to vector<2x32xf32>
    %164 = vector.extract_strided_slice %161 {offsets = [0, 64], sizes = [2, 32], strides = [1, 1]} : vector<2x128xf32> to vector<2x32xf32>
    %165 = vector.extract_strided_slice %161 {offsets = [0, 96], sizes = [2, 32], strides = [1, 1]} : vector<2x128xf32> to vector<2x32xf32>
    %166 = arith.mulf %163, %148 : vector<2x32xf32>
    %167 = arith.mulf %162, %165 : vector<2x32xf32>
    %168 = arith.addf %166, %167 : vector<2x32xf32>
    %169 = math.tanh %168 : vector<2x32xf32>
    %170 = arith.mulf %164, %169 : vector<2x32xf32>
    %c14 = arith.constant 14 : index
    %c0_33 = arith.constant 0 : index
    %171 = vector.load %arg8[%c14, %c0_33] : memref<16x32xf32, #tpu.memory_space<vmem>>, vector<2x32xf32>
    tpu.vector_store %arg8[%c14, %c0_33], %170 {strides = array<i32>} : memref<16x32xf32, #tpu.memory_space<vmem>>, vector<2x32xf32>,
    %c0_34 = arith.constant 0 : index
    %c0_35 = arith.constant 0 : index
    %172 = vector.load %arg8[%c0_34, %c0_35] : memref<16x32xf32, #tpu.memory_space<vmem>>, vector<16x32xf32>
    %c0_36 = arith.constant 0 : index
    %c0_37 = arith.constant 0 : index
    %173 = vector.load %arg5[%c0_36, %c0_37] : memref<32x8xf32, #tpu.memory_space<vmem>>, vector<32x8xf32>
    %cst_38 = arith.constant dense<0.000000e+00> : vector<16x8xf32>
    %174 = tpu.matmul %172, %173, %cst_38 {dimension_numbers = #tpu.dot_dimension_numbers<[1], [0], [0], [1], [0, 0, 1, 1], [], []>} : vector<16x32xf32>, vector<32x8xf32>, vector<16x8xf32> -> vector<16x8xf32>
    %c0_39 = arith.constant 0 : index
    %c0_40 = arith.constant 0 : index
    %175 = vector.load %arg6[%c0_39, %c0_40] : memref<1x8xf32, #tpu.memory_space<vmem>>, vector<1x8xf32>
    %176 = vector.broadcast %175 : vector<1x8xf32> to vector<16x8xf32>
    %177 = arith.addf %174, %176 : vector<16x8xf32>
    %cst_41 = arith.constant dense<0xFF800000> : vector<16xf32>
    %178 = vector.multi_reduction <maximumf>, %177, %cst_41 [1] : vector<16x8xf32> to vector<16xf32>
    %179 = vector.shape_cast %178 : vector<16xf32> to vector<16x1xf32>
    %180 = vector.broadcast %179 : vector<16x1xf32> to vector<16x8xf32>
    %181 = arith.subf %177, %180 : vector<16x8xf32>
    %182 = math.exp %181 : vector<16x8xf32>
    %cst_42 = arith.constant dense<0.000000e+00> : vector<16xf32>
    %183 = vector.multi_reduction <add>, %182, %cst_42 [1] : vector<16x8xf32> to vector<16xf32>
    %184 = vector.shape_cast %183 : vector<16xf32> to vector<16x1xf32>
    %185 = math.log %184 : vector<16x1xf32>
    %186 = arith.addf %185, %179 : vector<16x1xf32>
    %187 = vector.broadcast %186 : vector<16x1xf32> to vector<16x8xf32>
    %188 = arith.subf %177, %187 : vector<16x8xf32>
    %c0_43 = arith.constant 0 : index
    %c0_44 = arith.constant 0 : index
    %189 = vector.load %arg7[%c0_43, %c0_44] : memref<16x8xf32, #tpu.memory_space<vmem>>, vector<16x8xf32>
    tpu.vector_store %arg7[%c0_43, %c0_44], %188 {strides = array<i32>} : memref<16x8xf32, #tpu.memory_space<vmem>>, vector<16x8xf32>,
    return
  }
  func.func @transform_0(%arg0: i32) -> (i32, i32) {
    %c0_i32 = arith.constant 0 : i32
    %c0_i32_0 = arith.constant 0 : i32
    %c0_i32_1 = arith.constant 0 : i32
    return %c0_i32, %c0_i32_0 : i32, i32
  }
  func.func @transform_1(%arg0: i32) -> (i32, i32) {
    %c0_i32 = arith.constant 0 : i32
    %c0_i32_0 = arith.constant 0 : i32
    %c0_i32_1 = arith.constant 0 : i32
    return %c0_i32, %c0_i32_0 : i32, i32
  }
  func.func @transform_2(%arg0: i32) -> (i32, i32) {
    %c0_i32 = arith.constant 0 : i32
    %c0_i32_0 = arith.constant 0 : i32
    %c0_i32_1 = arith.constant 0 : i32
    return %c0_i32, %c0_i32_0 : i32, i32
  }
  func.func @transform_3(%arg0: i32) -> (i32, i32) {
    %c0_i32 = arith.constant 0 : i32
    %c0_i32_0 = arith.constant 0 : i32
    %c0_i32_1 = arith.constant 0 : i32
    return %c0_i32, %c0_i32_0 : i32, i32
  }
  func.func @transform_4(%arg0: i32) -> (i32, i32) {
    %c0_i32 = arith.constant 0 : i32
    %c0_i32_0 = arith.constant 0 : i32
    %c0_i32_1 = arith.constant 0 : i32
    return %c0_i32, %c0_i32_0 : i32, i32
  }
  func.func @transform_5(%arg0: i32) -> (i32, i32) {
    %c0_i32 = arith.constant 0 : i32
    %c0_i32_0 = arith.constant 0 : i32
    %c0_i32_1 = arith.constant 0 : i32
    return %c0_i32, %c0_i32_0 : i32, i32
  }
  func.func @transform_6(%arg0: i32) -> (i32, i32) {
    %c0_i32 = arith.constant 0 : i32
    %c0_i32_0 = arith.constant 0 : i32
    %c0_i32_1 = arith.constant 0 : i32
    return %c0_i32, %c0_i32_0 : i32, i32
  }
}

</mosaic_0001>

<bundles_post_ra>
// kernel: tpu_custom_call.1
= control target key start
LH: loop header
LB: loop body
LE: loop exit
PB: predicated region body
PF: predicated region fallthrough
CT: control target
= control target key end

     0   :  { %11 = vsyncpa [#allocation4], 0  ;;  %s1145_s0 = inlined_call_operand.hbm [shape: f32[16,16], index: 0, kind: input, shape index: {}]   ;;  %s1146_s1 = inlined_call_operand.hbm [shape: f32[16,128], index: 1, kind: input, shape index: {}]   ;;  %s1147_s2 = inlined_call_operand.vmem [shape: f32[32,128], index: 2, kind: input, shape index: {}]   ;;  %s1148_s3 = inlined_call_operand.vmem [shape: f32[1,128], index: 3, kind: input, shape index: {}]   ;;  %s1149_s4 = inlined_call_operand.vmem [shape: f32[32,8], index: 4, kind: input, shape index: {}]   ;;  %s1150_s5 = inlined_call_operand.vmem [shape: f32[1,8], index: 5, kind: input, shape index: {}]   ;;  %s1151_s6 = inlined_call_operand.vmem [shape: f32[16,8], index: 6, kind: output, shape index: {}]  }
   0x1   :  { %s17_s23 = sshll.u32 %s1145_s0, 4  ;;  %s18_s23 = int_to_ptr.hbm [resolvable:$true] %s17_s23 }
   0x2   :  { %12 = vsyncpa [#allocation6], 0  ;;  %s914_s24 = smov [#allocation3]   ;;  %s30_s28 = sshll.u32 %s1146_s1, 4  ;;  %s31_s28 = int_to_ptr.hbm [resolvable:$true] %s30_s28 }
   0x3   :  { %s19_s25 = sshll.u32 %s914_s24, 4  ;;  %s915_s29 = smov 128   ;;  %s20_s25 = int_to_ptr.vmem [resolvable:$true] %s19_s25 }
   0x4   :  { %s916_s30 = smov 8   ;;  %s917_s7 = smov [#allocation5]  }
   0x5   :  { %25 = dma.hbm_to_vmem [thread:$0]  %s18_s23, 256, %s20_s25, [#allocation4], %s915_s29, %s915_s29, %s916_s30  }
   0x6   :  { %s32_s8 = sshll.u32 %s917_s7, 4  ;;  %s33_s8 = int_to_ptr.vmem [resolvable:$true] %s32_s8 }
   0x7   :  { %38 = dma.hbm_to_vmem [thread:$0]  %s31_s28, 256, %s33_s8, [#allocation6], %s915_s29, %s915_s29, %s916_s30  }
   0x8   :  { %910 = dma.done.wait [#allocation4], 256  }
   0x9   :  { %911 = vsyncadd [#allocation4], 4294967040 }
   0xa   :  { %912 = dma.done.wait [#allocation6], 256  }
   0xb   :  { %913 = vsyncadd [#allocation6], 4294967040  ;;  %v965_v0 = vld [vmem:[%s1147_s2 + $0x18] sm:$0xff]  ;;  %v58_v1 = vld [vmem:[#allocation5 + $0x8] sm:$0xff]  ;;  %vm63_vm0 = vcmask 130048   ;;  %v918_v7 = vmov 0.0   ;;  %v97_v17 = vlaneseq }
   0xc   :  { %v970_v2 = vld [vmem:[%s1147_s2 + $0x10] sm:$0xff]  ;;  %116 = vmatpush.msra.mxu1 %v965_v0  ;;  %84 = vmatpush.msra.mxu0 %v58_v1  ;;  %v57_v3 = vld [vmem:[#allocation5] sm:$0xff]  ;;  %v976_v5 = vld [vmem:[%s1147_s2 + $0x8] sm:$0xff]  ;;  %s920_s16 = smov 64   ;;  %vm167_vm6 = vcmask 254976   ;;  %vm100_vm7 = vcmask 261120  }
   0xd   :  { %v55_v4 = vld [vmem:[#allocation3] sm:$0xff]  ;;  %183 = vmatpush.msra.mxu3 %v965_v0  ;;  %411 = vmatpush.msra.mxu2 %v965_v0  ;;  %v985_v6 = vld [vmem:[%s1147_s2] sm:$0xff]  ;;  %v1020_v20 = vand.u32 127, %v97_v17 }
   0xe   :  { %117 = vmatpush.msra.mxu1 %v970_v2  ;;  %85 = vmatpush.msra.mxu0 %v57_v3  ;;  %v1014_v8 = vld [vmem:[%s1148_s3] ss:$0 sm:$0xff]  ;;  %s919_s3 = smov 32  }
   0xf   :  { %762 = vmatmul.msk.f32.vlgmr.msra.gmra.mxu0 %vm63_vm0, %v55_v4  ;;  %184 = vmatpush.msra.mxu3 %v970_v2  ;;  %vm99_vm3 = vcmp.lt.s32.totalorder %v1020_v20, 96 }
  0x10   :  { %118 = vmatpush.msra.mxu1 %v976_v5  ;;  %412 = vmatpush.msra.mxu2 %v970_v2 }
  0x11   :  { %185 = vmatpush.msra.mxu3 %v976_v5  ;;  %555 = vmatpush.msrb.mxu0 %v965_v0 }
  0x12   :  { %119 = vmatpush.msra.mxu1 %v985_v6  ;;  %413 = vmatpush.msra.mxu2 %v976_v5 }
  0x13   :  { %120 = vmatmul.f32.vlgmr.msra.gmra.mxu1 %v918_v7  ;;  %186 = vmatpush.msra.mxu3 %v985_v6 }
  0x14   :  { %335 = vmatpush.msrb.mxu1 %v965_v0  ;;  %414 = vmatpush.msra.mxu2 %v985_v6 }
  0x15   :  { %259 = vmatpush.msrb.mxu3 %v965_v0  ;;  %556 = vmatpush.msrb.mxu0 %v970_v2 }
  0x16   :  { %336 = vmatpush.msrb.mxu1 %v970_v2 }
  0x17   :  { %260 = vmatpush.msrb.mxu3 %v970_v2  ;;  %557 = vmatpush.msrb.mxu0 %v976_v5 }
  0x18   :  { %337 = vmatpush.msrb.mxu1 %v976_v5 }
  0x19   :  { %261 = vmatpush.msrb.mxu3 %v976_v5  ;;  %558 = vmatpush.msrb.mxu0 %v985_v6 }
  0x1a   :  { %338 = vmatpush.msrb.mxu1 %v985_v6 }
  0x1b   :  { %262 = vmatpush.msrb.mxu3 %v985_v6 }
  0x1c   :  { %630 = vmatpush.msra.mxu1 %v965_v0 }
  0x1e   :  { %631 = vmatpush.msra.mxu1 %v970_v2 }
  0x20   :  { %632 = vmatpush.msra.mxu1 %v976_v5 }
  0x22   :  { %633 = vmatpush.msra.mxu1 %v985_v6 }
  0x8c   :  { %v87_v9 = vpop.f32.mrf.mxu0 }
  0x8d   :  { %v1017_v10 = vadd.f32 %v1014_v8, %v87_v9 }
  0x90   :  { %v121_v11 = vpop.f32.mrf.mxu1 }
  0x91   :  { %v124_v12 = vadd.f32 %v121_v11, %v1017_v10 }
  0x93   :  { %v764_v13 = vmul.f32 -1.442695, %v124_v12 }
  0x95   :  { %790 = vpow2.f32 %v764_v13 }
  0x9b   :  { %v791_v14 = vpop.eup %790 }
  0x9c   :  { %v128_v15 = vadd.f32 1.0, %v791_v14 }
  0x9e   :  { %792 = vrcp.f32 %v128_v15  ;;  %v140_v21 = vand.u32 2147483648, %v128_v15  ;;  %v138_v23 = vand.u32 2147483647, %v128_v15  ;;  %vm134_vm2 = vweird.f32 %v128_v15 }
  0x9f   :  { %794 = vtanh.f32 %v124_v12 }
  0xa0   :  { %v141_v25 = vor.u32 1.1754944e-38, %v140_v21  ;;  %vm139_vm5 = vcmp.eq.f32.partialorder %v138_v23, 8.507059e+37 }
  0xa4   :  { %v793_v16 = vpop.eup %792 }
  0xa5   :  { %v130_v18 = vmul.f32 %v793_v16, %v128_v15  ;;  %vm135_vm1 = vweird.f32 %v793_v16  ;;  %v795_v27 = vpop.eup %794 }
  0xa6   :  { %vm136_vm4 = vmor %vm134_vm2, %vm135_vm1 }
  0xa7   :  { %v131_v19 = vsub.f32 1.0, %v130_v18 }
  0xa9   :  { %v132_v22 = vmul.f32 %v793_v16, %v131_v19 }
  0xab   :  { %v133_v24 = vadd.f32 %v793_v16, %v132_v22 }
  0xad   :  { %v137_v26 = vsel %vm136_vm4, %v793_v16, %v133_v24 }
  0xae   :  { %v142_v28 = vsel %vm139_vm5, %v141_v25, %v137_v26 }
  0xaf   :  { %v145_v29 = vsel %vm99_vm3, %v142_v28, %v795_v27 }
  0xb0   :  { %148 = vrot.lane.b32.xlu0 %v145_v29, %s919_s3  ;;  %v146_v32 = vmul.f32 0.0, %v145_v29 }
 0x122   :  { %v149_v30 = vpop.permute.xlu0 %148 }
 0x123   :  { %v151_v31 = vmul.f32 %v149_v30, %v145_v29 }
 0x125   :  { %153 = vrot.lane.b32.xlu0 %v151_v31, %s919_s3 }
 0x197   :  { %v154_v33 = vpop.permute.xlu0 %153 }
 0x198   :  { %v156_v34 = vadd.f32 %v154_v33, %v146_v32 }
 0x19a   :  { %796 = vtanh.f32 %v156_v34  ;;  %v217_v59 = vrot.slane %v156_v34, 6 }
 0x1a0   :  { %v797_v35 = vpop.eup %796 }
 0x1a1   :  { %159 = vrot.lane.b32.xlu1 %v797_v35, %s919_s3 }
 0x213   :  { %v160_v36 = vpop.permute.xlu1 %159 }
 0x214   :  { %v162_v37 = vmul.f32 %v160_v36, %v145_v29 }
 0x216   :  { %164 = vrot.lane.b32.xlu1 %v162_v37, %s920_s16 }
 0x288   :  { %v165_v38 = vpop.permute.xlu1 %164 }
 0x289   :  { %168 = vst.msk [vmem:[#allocation2] sm:$0x3] %vm167_vm6, %v165_v38  ;;  %765 = vmatmul.msk.f32.vlgmr.msra.gmra.mxu3 %vm100_vm7, %v165_v38 }
 0x28a   :  { %480 = vmatpush.msra.mxu3 %v965_v0 }
 0x28c   :  { %481 = vmatpush.msra.mxu3 %v970_v2 }
 0x28e   :  { %482 = vmatpush.msra.mxu3 %v976_v5 }
 0x290   :  { %483 = vmatpush.msra.mxu3 %v985_v6 }
 0x30c   :  { %v188_v39 = vpop.f32.mrf.mxu3 }
 0x30d   :  { %v192_v40 = vrot.slane %v188_v39, 6 }
 0x30f   :  { %v194_v41 = vadd.f32 %v192_v40, %v1017_v10 }
 0x311   :  { %v766_v42 = vmul.f32 -1.442695, %v194_v41 }
 0x313   :  { %798 = vpow2.f32 %v766_v42 }
 0x319   :  { %v799_v43 = vpop.eup %798 }
 0x31a   :  { %v198_v44 = vadd.f32 1.0, %v799_v43 }
 0x31c   :  { %800 = vrcp.f32 %v198_v44  ;;  %v210_v48 = vand.u32 2147483648, %v198_v44  ;;  %v208_v50 = vand.u32 2147483647, %v198_v44  ;;  %vm204_vm9 = vweird.f32 %v198_v44 }
 0x31d   :  { %802 = vtanh.f32 %v194_v41 }
 0x31e   :  { %v211_v52 = vor.u32 1.1754944e-38, %v210_v48  ;;  %vm209_vm11 = vcmp.eq.f32.partialorder %v208_v50, 8.507059e+37 }
 0x322   :  { %v801_v45 = vpop.eup %800 }
 0x323   :  { %v200_v46 = vmul.f32 %v801_v45, %v198_v44  ;;  %vm205_vm8 = vweird.f32 %v801_v45  ;;  %v803_v54 = vpop.eup %802 }
 0x324   :  { %vm206_vm10 = vmor %vm204_vm9, %vm205_vm8 }
 0x325   :  { %v201_v47 = vsub.f32 1.0, %v200_v46 }
 0x327   :  { %v202_v49 = vmul.f32 %v801_v45, %v201_v47 }
 0x329   :  { %v203_v51 = vadd.f32 %v801_v45, %v202_v49 }
 0x32b   :  { %v207_v53 = vsel %vm206_vm10, %v801_v45, %v203_v51 }
 0x32c   :  { %v212_v55 = vsel %vm209_vm11, %v211_v52, %v207_v53 }
 0x32d   :  { %v215_v56 = vsel %vm99_vm3, %v212_v55, %v803_v54 }
 0x32e   :  { %221 = vrot.lane.b32.xlu2 %v215_v56, %s919_s3  ;;  %v219_v60 = vmul.f32 %v217_v59, %v215_v56 }
 0x388   :  { %v222_v57 = vpop.permute.xlu2 %221 }
 0x389   :  { %v224_v58 = vmul.f32 %v222_v57, %v215_v56 }
 0x38b   :  { %226 = vrot.lane.b32.xlu2 %v224_v58, %s919_s3 }
 0x3e5   :  { %v227_v61 = vpop.permute.xlu2 %226 }
 0x3e6   :  { %v229_v62 = vadd.f32 %v227_v61, %v219_v60 }
 0x3e8   :  { %804 = vtanh.f32 %v229_v62  ;;  %v293_v27 = vrot.slane %v229_v62, 6 }
 0x3ee   :  { %v805_v63 = vpop.eup %804 }
 0x3ef   :  { %232 = vrot.lane.b32.xlu0 %v805_v63, %s919_s3  ;;  %v56_v63 = vld [vmem:[#allocation3 + $0x8] sm:$0xff] }
 0x3f0   :  { %763 = vmatmul.msk.f32.gmra.mxu0 %vm63_vm0, %v56_v63 }
 0x461   :  { %v233_v0 = vpop.permute.xlu0 %232 }
 0x462   :  { %v1041_v1 = vmul.f32 %v233_v0, %v215_v56 }
 0x464   :  { %v242_v2 = vrot.slane %v1041_v1, 2 }
 0x466   :  { %243 = vrot.lane.b32.xlu1 %v242_v2, %s920_s16 }
 0x46d   :  { %v90_v2 = vpop.f32.mrf.mxu0 }
 0x4d8   :  { %v244_v3 = vpop.permute.xlu1 %243 }
 0x4d9   :  { %767 = vmatmul.msk.f32.vlgmr.msrb.gmra.mxu3 %vm100_vm7, %v244_v3  ;;  %v1070_v3 = vadd.f32 %v1014_v8, %v90_v2 }
 0x55c   :  { %v264_v4 = vpop.f32.mrf.mxu3 }
 0x55d   :  { %v268_v5 = vrot.slane %v264_v4, 4 }
 0x55f   :  { %v270_v6 = vadd.f32 %v268_v5, %v1017_v10 }
 0x561   :  { %v768_v7 = vmul.f32 -1.442695, %v270_v6 }
 0x563   :  { %806 = vpow2.f32 %v768_v7 }
 0x569   :  { %v807_v9 = vpop.eup %806 }
 0x56a   :  { %v274_v11 = vadd.f32 1.0, %v807_v9 }
 0x56c   :  { %808 = vrcp.f32 %v274_v11  ;;  %v286_v15 = vand.u32 2147483648, %v274_v11  ;;  %v284_v17 = vand.u32 2147483647, %v274_v11  ;;  %vm280_vm13 = vweird.f32 %v274_v11 }
 0x56d   :  { %810 = vtanh.f32 %v270_v6 }
 0x56e   :  { %v287_v19 = vor.u32 1.1754944e-38, %v286_v15  ;;  %vm285_vm15 = vcmp.eq.f32.partialorder %v284_v17, 8.507059e+37 }
 0x572   :  { %v809_v12 = vpop.eup %808 }
 0x573   :  { %v276_v13 = vmul.f32 %v809_v12, %v274_v11  ;;  %vm281_vm12 = vweird.f32 %v809_v12  ;;  %v811_v22 = vpop.eup %810 }
 0x574   :  { %vm282_vm14 = vmor %vm280_vm13, %vm281_vm12 }
 0x575   :  { %v277_v14 = vsub.f32 1.0, %v276_v13 }
 0x577   :  { %v278_v16 = vmul.f32 %v809_v12, %v277_v14 }
 0x579   :  { %v279_v18 = vadd.f32 %v809_v12, %v278_v16 }
 0x57b   :  { %v283_v21 = vsel %vm282_vm14, %v809_v12, %v279_v18 }
 0x57c   :  { %v288_v23 = vsel %vm285_vm15, %v287_v19, %v283_v21 }
 0x57d   :  { %v291_v24 = vsel %vm99_vm3, %v288_v23, %v811_v22 }
 0x57e   :  { %297 = vrot.lane.b32.xlu2 %v291_v24, %s919_s3  ;;  %v295_v28 = vmul.f32 %v293_v27, %v291_v24 }
 0x5d8   :  { %v298_v25 = vpop.permute.xlu2 %297 }
 0x5d9   :  { %v300_v26 = vmul.f32 %v298_v25, %v291_v24 }
 0x5db   :  { %302 = vrot.lane.b32.xlu0 %v300_v26, %s919_s3 }
 0x64d   :  { %v303_v29 = vpop.permute.xlu0 %302 }
 0x64e   :  { %v305_v30 = vadd.f32 %v303_v29, %v295_v28 }
 0x650   :  { %812 = vtanh.f32 %v305_v30  ;;  %v369_v55 = vrot.slane %v305_v30, 6 }
 0x656   :  { %v813_v31 = vpop.eup %812 }
 0x657   :  { %308 = vrot.lane.b32.xlu1 %v813_v31, %s919_s3 }
 0x6c9   :  { %v309_v32 = vpop.permute.xlu1 %308 }
 0x6ca   :  { %v1052_v33 = vmul.f32 %v309_v32, %v291_v24 }
 0x6cc   :  { %v318_v34 = vrot.slane %v1052_v33, 4 }
 0x6ce   :  { %319 = vrot.lane.b32.xlu2 %v318_v34, %s920_s16 }
 0x728   :  { %v320_v35 = vpop.permute.xlu2 %319 }
 0x729   :  { %769 = vmatmul.msk.f32.vlgmr.msrb.gmra.mxu1 %vm100_vm7, %v320_v35 }
 0x7a6   :  { %v340_v36 = vpop.f32.mrf.mxu1 }
 0x7a7   :  { %v344_v37 = vrot.slane %v340_v36, 2 }
 0x7a9   :  { %v346_v38 = vadd.f32 %v344_v37, %v1017_v10 }
 0x7ab   :  { %v770_v39 = vmul.f32 -1.442695, %v346_v38 }
 0x7ad   :  { %814 = vpow2.f32 %v770_v39 }
 0x7b3   :  { %v815_v40 = vpop.eup %814 }
 0x7b4   :  { %v350_v41 = vadd.f32 1.0, %v815_v40 }
 0x7b6   :  { %816 = vrcp.f32 %v350_v41  ;;  %v362_v45 = vand.u32 2147483648, %v350_v41  ;;  %v360_v47 = vand.u32 2147483647, %v350_v41  ;;  %vm356_vm2 = vweird.f32 %v350_v41 }
 0x7b7   :  { %818 = vtanh.f32 %v346_v38 }
 0x7b8   :  { %v363_v49 = vor.u32 1.1754944e-38, %v362_v45  ;;  %vm361_vm5 = vcmp.eq.f32.partialorder %v360_v47, 8.507059e+37 }
 0x7bc   :  { %v817_v42 = vpop.eup %816 }
 0x7bd   :  { %v352_v43 = vmul.f32 %v817_v42, %v350_v41  ;;  %vm357_vm1 = vweird.f32 %v817_v42  ;;  %v819_v10 = vpop.eup %818 }
 0x7be   :  { %vm358_vm4 = vmor %vm356_vm2, %vm357_vm1 }
 0x7bf   :  { %v353_v44 = vsub.f32 1.0, %v352_v43 }
 0x7c1   :  { %v354_v46 = vmul.f32 %v817_v42, %v353_v44 }
 0x7c3   :  { %v355_v48 = vadd.f32 %v817_v42, %v354_v46 }
 0x7c5   :  { %v359_v50 = vsel %vm358_vm4, %v817_v42, %v355_v48 }
 0x7c6   :  { %v364_v51 = vsel %vm361_vm5, %v363_v49, %v359_v50 }
 0x7c7   :  { %v367_v52 = vsel %vm99_vm3, %v364_v51, %v819_v10 }
 0x7c8   :  { %373 = vrot.lane.b32.xlu0 %v367_v52, %s919_s3  ;;  %v371_v56 = vmul.f32 %v369_v55, %v367_v52 }
 0x83a   :  { %v374_v53 = vpop.permute.xlu0 %373 }
 0x83b   :  { %v376_v54 = vmul.f32 %v374_v53, %v367_v52 }
 0x83d   :  { %378 = vrot.lane.b32.xlu1 %v376_v54, %s919_s3 }
 0x8af   :  { %v379_v57 = vpop.permute.xlu1 %378 }
 0x8b0   :  { %v381_v58 = vadd.f32 %v379_v57, %v371_v56 }
 0x8b2   :  { %820 = vtanh.f32 %v381_v58  ;;  %v442_v25 = vrot.slane %v381_v58, 6 }
 0x8b8   :  { %v821_v59 = vpop.eup %820 }
 0x8b9   :  { %384 = vrot.lane.b32.xlu2 %v821_v59, %s919_s3 }
 0x913   :  { %v385_v60 = vpop.permute.xlu2 %384 }
 0x914   :  { %v1063_v61 = vmul.f32 %v385_v60, %v367_v52 }
 0x916   :  { %v394_v62 = vrot.slane %v1063_v61, 6 }
 0x918   :  { %395 = vrot.lane.b32.xlu0 %v394_v62, %s920_s16 }
 0x98a   :  { %v396_v0 = vpop.permute.xlu0 %395 }
 0x98b   :  { %771 = vmatmul.msk.f32.vlgmr.msra.gmra.mxu2 %vm100_vm7, %v396_v0 }
 0xa0e   :  { %v416_v4 = vpop.f32.mrf.mxu2 }
 0xa0f   :  { %v419_v5 = vadd.f32 %v416_v4, %v1070_v3 }
 0xa11   :  { %v772_v6 = vmul.f32 -1.442695, %v419_v5 }
 0xa13   :  { %822 = vpow2.f32 %v772_v6 }
 0xa19   :  { %v823_v7 = vpop.eup %822 }
 0xa1a   :  { %v423_v9 = vadd.f32 1.0, %v823_v7 }
 0xa1c   :  { %824 = vrcp.f32 %v423_v9  ;;  %v435_v14 = vand.u32 2147483648, %v423_v9  ;;  %v433_v16 = vand.u32 2147483647, %v423_v9  ;;  %vm429_vm8 = vweird.f32 %v423_v9 }
 0xa1d   :  { %826 = vtanh.f32 %v419_v5 }
 0xa1e   :  { %v436_v8 = vor.u32 1.1754944e-38, %v435_v14  ;;  %vm434_vm10 = vcmp.eq.f32.partialorder %v433_v16, 8.507059e+37 }
 0xa22   :  { %v825_v11 = vpop.eup %824 }
 0xa23   :  { %v425_v12 = vmul.f32 %v825_v11, %v423_v9  ;;  %vm430_vm0 = vweird.f32 %v825_v11  ;;  %v827_v19 = vpop.eup %826 }
 0xa24   :  { %vm431_vm9 = vmor %vm429_vm8, %vm430_vm0 }
 0xa25   :  { %v426_v13 = vsub.f32 1.0, %v425_v12 }
 0xa27   :  { %v427_v15 = vmul.f32 %v825_v11, %v426_v13 }
 0xa29   :  { %v428_v17 = vadd.f32 %v825_v11, %v427_v15 }
 0xa2b   :  { %v432_v18 = vsel %vm431_vm9, %v825_v11, %v428_v17  ;;  %vm240_vm9 = vcmask 257026  }
 0xa2c   :  { %v437_v21 = vsel %vm434_vm10, %v436_v8, %v432_v18  ;;  %vm392_vm10 = vcmask 261126  }
 0xa2d   :  { %v440_v22 = vsel %vm99_vm3, %v437_v21, %v827_v19 }
 0xa2e   :  { %446 = vrot.lane.b32.xlu1 %v440_v22, %s919_s3  ;;  %v444_v26 = vmul.f32 %v442_v25, %v440_v22 }
 0xaa0   :  { %v447_v23 = vpop.permute.xlu1 %446 }
 0xaa1   :  { %v449_v24 = vmul.f32 %v447_v23, %v440_v22 }
 0xaa3   :  { %451 = vrot.lane.b32.xlu2 %v449_v24, %s919_s3 }
 0xafd   :  { %v452_v27 = vpop.permute.xlu2 %451 }
 0xafe   :  { %v454_v28 = vadd.f32 %v452_v27, %v444_v26 }
 0xb00   :  { %828 = vtanh.f32 %v454_v28  ;;  %v514_v53 = vrot.slane %v454_v28, 6 }
 0xb06   :  { %v829_v29 = vpop.eup %828 }
 0xb07   :  { %457 = vrot.lane.b32.xlu0 %v829_v29, %s919_s3 }
 0xb79   :  { %v458_v30 = vpop.permute.xlu0 %457 }
 0xb7a   :  { %v460_v31 = vmul.f32 %v458_v30, %v440_v22 }
 0xb7c   :  { %462 = vrot.lane.b32.xlu1 %v460_v31, %s920_s16 }
 0xbee   :  { %v463_v32 = vpop.permute.xlu1 %462 }
 0xbef   :  { %465 = vst.msk [vmem:[#allocation2 + $0x8] sm:$0x3] %vm167_vm6, %v463_v32  ;;  %773 = vmatmul.msk.f32.vlgmr.msra.gmra.mxu3 %vm100_vm7, %v463_v32 }
 0xc72   :  { %v485_v34 = vpop.f32.mrf.mxu3 }
 0xc73   :  { %v489_v35 = vrot.slane %v485_v34, 6 }
 0xc75   :  { %v491_v36 = vadd.f32 %v489_v35, %v1070_v3 }
 0xc77   :  { %v774_v37 = vmul.f32 -1.442695, %v491_v36 }
 0xc79   :  { %830 = vpow2.f32 %v774_v37 }
 0xc7f   :  { %v831_v38 = vpop.eup %830 }
 0xc80   :  { %v495_v39 = vadd.f32 1.0, %v831_v38 }
 0xc82   :  { %832 = vrcp.f32 %v495_v39  ;;  %v507_v43 = vand.u32 2147483648, %v495_v39  ;;  %v505_v45 = vand.u32 2147483647, %v495_v39  ;;  %vm501_vm6 = vweird.f32 %v495_v39 }
 0xc83   :  { %834 = vtanh.f32 %v491_v36 }
 0xc84   :  { %v508_v47 = vor.u32 1.1754944e-38, %v507_v43  ;;  %vm506_vm13 = vcmp.eq.f32.partialorder %v505_v45, 8.507059e+37 }
 0xc88   :  { %v833_v40 = vpop.eup %832 }
 0xc89   :  { %v497_v41 = vmul.f32 %v833_v40, %v495_v39  ;;  %vm502_vm11 = vweird.f32 %v833_v40  ;;  %v835_v49 = vpop.eup %834 }
 0xc8a   :  { %vm503_vm12 = vmor %vm501_vm6, %vm502_vm11  ;;  %vm727_vm11 = vcmask 64512  }
 0xc8b   :  { %v498_v42 = vsub.f32 1.0, %v497_v41 }
 0xc8d   :  { %v499_v44 = vmul.f32 %v833_v40, %v498_v42 }
 0xc8f   :  { %v500_v46 = vadd.f32 %v833_v40, %v499_v44 }
 0xc91   :  { %v504_v48 = vsel %vm503_vm12, %v833_v40, %v500_v46 }
 0xc92   :  { %v509_v50 = vsel %vm506_vm13, %v508_v47, %v504_v48 }
 0xc93   :  { %v512_v10 = vsel %vm99_vm3, %v509_v50, %v835_v49 }
 0xc94   :  { %518 = vrot.lane.b32.xlu2 %v512_v10, %s919_s3  ;;  %v516_v54 = vmul.f32 %v514_v53, %v512_v10 }
 0xcee   :  { %v519_v51 = vpop.permute.xlu2 %518 }
 0xcef   :  { %v521_v52 = vmul.f32 %v519_v51, %v512_v10 }
 0xcf1   :  { %523 = vrot.lane.b32.xlu0 %v521_v52, %s919_s3 }
 0xd63   :  { %v524_v55 = vpop.permute.xlu0 %523 }
 0xd64   :  { %v526_v56 = vadd.f32 %v524_v55, %v516_v54 }
 0xd66   :  { %836 = vtanh.f32 %v526_v56  ;;  %v589_v23 = vrot.slane %v526_v56, 6 }
 0xd6c   :  { %v837_v57 = vpop.eup %836 }
 0xd6d   :  { %529 = vrot.lane.b32.xlu1 %v837_v57, %s919_s3 }
 0xddf   :  { %v530_v58 = vpop.permute.xlu1 %529 }
 0xde0   :  { %v1087_v59 = vmul.f32 %v530_v58, %v512_v10  ;;  %v692_v58 = vld [vmem:[%s1149_s4 + $0x10] sm:$0xff] }
 0xde2   :  { %v538_v60 = vrot.slane %v1087_v59, 2 }
 0xde4   :  { %539 = vrot.lane.b32.xlu2 %v538_v60, %s920_s16  ;;  %v690_v60 = vld [vmem:[%s1149_s4] sm:$0xff] }
 0xe3e   :  { %v540_v62 = vpop.permute.xlu2 %539 }
 0xe3f   :  { %775 = vmatmul.msk.f32.vlgmr.msrb.gmra.mxu0 %vm100_vm7, %v540_v62 }
 0xebc   :  { %v560_v63 = vpop.f32.mrf.mxu0 }
 0xebd   :  { %v564_v0 = vrot.slane %v560_v63, 4 }
 0xebf   :  { %v566_v2 = vadd.f32 %v564_v0, %v1070_v3 }
 0xec1   :  { %v776_v4 = vmul.f32 -1.442695, %v566_v2 }
 0xec3   :  { %838 = vpow2.f32 %v776_v4 }
 0xec9   :  { %v839_v5 = vpop.eup %838 }
 0xeca   :  { %v570_v6 = vadd.f32 1.0, %v839_v5  ;;  %v789_v5 = vld [vmem:[%s1150_s5] ss:$0 sm:$0xff] }
 0xecc   :  { %840 = vrcp.f32 %v570_v6  ;;  %v582_v12 = vand.u32 2147483648, %v570_v6  ;;  %v580_v14 = vand.u32 2147483647, %v570_v6  ;;  %vm576_vm15 = vweird.f32 %v570_v6 }
 0xecd   :  { %842 = vtanh.f32 %v566_v2 }
 0xece   :  { %v583_v16 = vor.u32 1.1754944e-38, %v582_v12  ;;  %vm581_vm2 = vcmp.eq.f32.partialorder %v580_v14, 8.507059e+37 }
 0xed2   :  { %v841_v7 = vpop.eup %840 }
 0xed3   :  { %v572_v9 = vmul.f32 %v841_v7, %v570_v6  ;;  %vm577_vm14 = vweird.f32 %v841_v7  ;;  %v843_v8 = vpop.eup %842 }
 0xed4   :  { %vm578_vm1 = vmor %vm576_vm15, %vm577_vm14 }
 0xed5   :  { %v573_v11 = vsub.f32 1.0, %v572_v9 }
 0xed7   :  { %v574_v13 = vmul.f32 %v841_v7, %v573_v11 }
 0xed9   :  { %v575_v15 = vadd.f32 %v841_v7, %v574_v13 }
 0xedb   :  { %v579_v17 = vsel %vm578_vm1, %v841_v7, %v575_v15 }
 0xedc   :  { %v584_v18 = vsel %vm581_vm2, %v583_v16, %v579_v17 }
 0xedd   :  { %v587_v19 = vsel %vm99_vm3, %v584_v18, %v843_v8 }
 0xede   :  { %593 = vrot.lane.b32.xlu0 %v587_v19, %s919_s3  ;;  %v591_v24 = vmul.f32 %v589_v23, %v587_v19 }
 0xf50   :  { %v594_v21 = vpop.permute.xlu0 %593 }
 0xf51   :  { %v596_v22 = vmul.f32 %v594_v21, %v587_v19 }
 0xf53   :  { %598 = vrot.lane.b32.xlu1 %v596_v22, %s919_s3 }
 0xfc5   :  { %v599_v25 = vpop.permute.xlu1 %598 }
 0xfc6   :  { %v601_v26 = vadd.f32 %v599_v25, %v591_v24 }
 0xfc8   :  { %844 = vtanh.f32 %v601_v26  ;;  %v664_v52 = vrot.slane %v601_v26, 6 }
 0xfce   :  { %v845_v27 = vpop.eup %844 }
 0xfcf   :  { %604 = vrot.lane.b32.xlu2 %v845_v27, %s919_s3 }
0x1029   :  { %v605_v28 = vpop.permute.xlu2 %604 }
0x102a   :  { %v607_v29 = vmul.f32 %v605_v28, %v587_v19 }
0x102c   :  { %v613_v30 = vrot.slane %v607_v29, 4 }
0x102e   :  { %614 = vrot.lane.b32.xlu0 %v613_v30, %s920_s16 }
0x10a0   :  { %v615_v31 = vpop.permute.xlu0 %614 }
0x10a1   :  { %777 = vmatmul.msk.f32.vlgmr.msra.gmra.mxu1 %vm100_vm7, %v615_v31 }
0x111e   :  { %v635_v32 = vpop.f32.mrf.mxu1 }
0x111f   :  { %v639_v34 = vrot.slane %v635_v32, 2 }
0x1121   :  { %v641_v35 = vadd.f32 %v639_v34, %v1070_v3 }
0x1123   :  { %v778_v36 = vmul.f32 -1.442695, %v641_v35 }
0x1125   :  { %846 = vpow2.f32 %v778_v36 }
0x112b   :  { %v847_v37 = vpop.eup %846 }
0x112c   :  { %v645_v38 = vadd.f32 1.0, %v847_v37 }
0x112e   :  { %848 = vrcp.f32 %v645_v38  ;;  %v657_v42 = vand.u32 2147483648, %v645_v38  ;;  %v655_v44 = vand.u32 2147483647, %v645_v38  ;;  %vm651_vm5 = vweird.f32 %v645_v38 }
0x112f   :  { %850 = vtanh.f32 %v641_v35 }
0x1130   :  { %v658_v46 = vor.u32 1.1754944e-38, %v657_v42  ;;  %vm656_vm8 = vcmp.eq.f32.partialorder %v655_v44, 8.507059e+37 }
0x1134   :  { %v849_v39 = vpop.eup %848 }
0x1135   :  { %v647_v40 = vmul.f32 %v849_v39, %v645_v38  ;;  %vm652_vm4 = vweird.f32 %v849_v39  ;;  %v851_v3 = vpop.eup %850 }
0x1136   :  { %vm653_vm0 = vmor %vm651_vm5, %vm652_vm4 }
0x1137   :  { %v648_v41 = vsub.f32 1.0, %v647_v40 }
0x1139   :  { %v649_v43 = vmul.f32 %v849_v39, %v648_v41 }
0x113b   :  { %v650_v45 = vadd.f32 %v849_v39, %v649_v43 }
0x113d   :  { %v654_v47 = vsel %vm653_vm0, %v849_v39, %v650_v45 }
0x113e   :  { %v659_v48 = vsel %vm656_vm8, %v658_v46, %v654_v47 }
0x113f   :  { %v662_v49 = vsel %vm99_vm3, %v659_v48, %v851_v3  ;;  %vm316_vm3 = vcmask 259076  }
0x1140   :  { %668 = vrot.lane.b32.xlu1 %v662_v49, %s919_s3  ;;  %v666_v53 = vmul.f32 %v664_v52, %v662_v49 }
0x1148   :  { %237 = vrot.lane.b32.xlu1 %v1041_v1, %s920_s16 }
0x1150   :  { %534 = vrot.lane.b32.xlu1 %v1087_v59, %s920_s16  ;;  %v691_v59 = vld [vmem:[%s1149_s4 + $0x8] sm:$0xff] }
0x11b2   :  { %v669_v50 = vpop.permute.xlu1 %668 }
0x11b3   :  { %v671_v10 = vmul.f32 %v669_v50, %v662_v49 }
0x11b5   :  { %673 = vrot.lane.b32.xlu2 %v671_v10, %s919_s3 }
0x11ba   :  { %v238_v51 = vpop.permute.xlu1 %237 }
0x11bb   :  { %241 = vst.msk [vmem:[#allocation2] sm:$0xc] %vm240_vm9, %v238_v51 }
0x11bd   :  { %313 = vrot.lane.b32.xlu2 %v1052_v33, %s920_s16  ;;  %v693_v33 = vld [vmem:[%s1149_s4 + $0x18] sm:$0xff] }
0x11be   :  { %716 = vmatpush.msrb.mxu2 %v693_v33 }
0x11c0   :  { %717 = vmatpush.msrb.mxu2 %v692_v58 }
0x11c2   :  { %v535_v20 = vpop.permute.xlu1 %534  ;;  %718 = vmatpush.msrb.mxu2 %v691_v59 }
0x11c3   :  { %537 = vst.msk [vmem:[#allocation2 + $0x8] sm:$0xc] %vm240_vm9, %v535_v20 }
0x11c4   :  { %719 = vmatpush.msrb.mxu2 %v690_v60 }
0x11c5   :  { %609 = vrot.lane.b32.xlu2 %v607_v29, %s920_s16 }
0x120f   :  { %v674_v1 = vpop.permute.xlu2 %673 }
0x1210   :  { %v676_v54 = vadd.f32 %v674_v1, %v666_v53 }
0x1212   :  { %852 = vtanh.f32 %v676_v54 }
0x1217   :  { %v314_v55 = vpop.permute.xlu2 %313 }
0x1218   :  { %v853_v56 = vpop.eup %852  ;;  %317 = vst.msk [vmem:[#allocation2] sm:$0x30] %vm316_vm3, %v314_v55 }
0x1219   :  { %679 = vrot.lane.b32.xlu0 %v853_v56, %s919_s3 }
0x121f   :  { %v610_v57 = vpop.permute.xlu2 %609 }
0x1220   :  { %612 = vst.msk [vmem:[#allocation2 + $0x8] sm:$0x30] %vm316_vm3, %v610_v57 }
0x1221   :  { %389 = vrot.lane.b32.xlu0 %v1063_v61, %s920_s16 }
0x128b   :  { %v680_v61 = vpop.permute.xlu0 %679 }
0x128c   :  { %v682_v62 = vmul.f32 %v680_v61, %v662_v49 }
0x128e   :  { %684 = vrot.lane.b32.xlu0 %v682_v62, %s920_s16 }
0x1293   :  { %v390_v63 = vpop.permute.xlu0 %389 }
0x1294   :  { %393 = vst.msk [vmem:[#allocation2] sm:$0xc0] %vm392_vm10, %v390_v63 }
0x129b   :  { %v688_v0 = vld [vmem:[#allocation2] sm:$0xff] }
0x129c   :  { %779 = vmatmul.msk.f32.vlgmr.msrb.gmra.mxu2 %vm100_vm7, %v688_v0 }
0x1300   :  { %v685_v2 = vpop.permute.xlu0 %684 }
0x1301   :  { %687 = vst.msk [vmem:[#allocation2 + $0x8] sm:$0xc0] %vm392_vm10, %v685_v2 }
0x1308   :  { %v689_v4 = vld [vmem:[#allocation2 + $0x8] sm:$0xff] }
0x1309   :  { %780 = vmatmul.msk.f32.gmra.mxu2 %vm100_vm7, %v689_v4 }
0x131f   :  { %v721_v6 = vpop.f32.mrf.mxu2 }
0x1320   :  { %v722_v7 = vadd.f32 %v789_v5, %v721_v6 }
0x1322   :  { %v728_v9 = vsel %vm727_vm11, %v722_v7, -inf }
0x1323   :  { %729 = vmax.xlane.f32.xlu1 %v728_v9 }
0x138c   :  { %v724_v11 = vpop.f32.mrf.mxu2 }
0x138d   :  { %v725_v12 = vadd.f32 %v789_v5, %v724_v11 }
0x138f   :  { %v731_v13 = vsel %vm727_vm11, %v725_v12, -inf }
0x1390   :  { %732 = vmax.xlane.f32.xlu2 %v731_v13 }
0x1396   :  { %v730_v14 = vpop.xlane.xlu1 %729 }
0x1397   :  { %v734_v15 = vsub.f32 %v722_v7, %v730_v14 }
0x1399   :  { %v736_v16 = vmul.f32 1.442695, %v734_v15 }
0x139b   :  { %854 = vpow2.f32 %v736_v16 }
0x13a1   :  { %v855_v17 = vpop.eup %854 }
0x13a2   :  { %v740_v8 = vsel %vm727_vm11, %v855_v17, 0.0 }
0x13a3   :  { %741 = vadd.xlane.f32.xlu0 %v740_v8 }
0x1403   :  { %v733_v18 = vpop.xlane.xlu2 %732 }
0x1404   :  { %v735_v19 = vsub.f32 %v725_v12, %v733_v18 }
0x1406   :  { %v738_v21 = vmul.f32 1.442695, %v735_v19 }
0x1408   :  { %856 = vpow2.f32 %v738_v21 }
0x140e   :  { %v857_v22 = vpop.eup %856 }
0x140f   :  { %v743_v23 = vsel %vm727_vm11, %v857_v22, 0.0 }
0x1410   :  { %744 = vadd.xlane.f32.xlu2 %v743_v23 }
0x1416   :  { %v742_v24 = vpop.xlane.xlu0 %741 }
0x1417   :  { %858 = vlog2.f32 %v742_v24 }
0x141d   :  { %v859_v25 = vpop.eup %858 }
0x141e   :  { %v747_v26 = vmul.f32 0.6931472, %v859_v25 }
0x1420   :  { %v750_v27 = vadd.f32 %v747_v26, %v730_v14 }
0x1422   :  { %v752_v28 = vsub.f32 %v722_v7, %v750_v27 }
0x1424   :  { %754 = vst.msk [vmem:[%s1151_s6] sm:$0xff] %vm727_vm11, %v752_v28 }
0x1483   :  { %v745_v29 = vpop.xlane.xlu2 %744 }
0x1484   :  { %860 = vlog2.f32 %v745_v29 }
0x148a   :  { %v861_v30 = vpop.eup %860 }
0x148b   :  { %v749_v31 = vmul.f32 0.6931472, %v861_v30 }
0x148d   :  { %v751_v32 = vadd.f32 %v749_v31, %v733_v18 }
0x148f   :  { %v753_v34 = vsub.f32 %v725_v12, %v751_v32 }
0x1491   :  { %755 = vst.msk [vmem:[%s1151_s6 + $0x8] sm:$0xff] %vm727_vm11, %v753_v34 }
0x1492   :  { %760 = vsyncpa [#allocation4], 1 }
0x1493   :  { %761 = vsyncpa [#allocation6], 1 }

</bundles_post_ra>
